<compile_context>
chip_gen: v7x
topology: tpu7x:2x2x1
jax: 0.10.0
libtpu: 0.0.40
codegen_flags: <defaults>
</compile_context>

<pallas_src>
import functools

import jax
import jax.numpy as jnp
from jax import lax
from jax.experimental import pallas as pl
from jax.experimental.pallas import tpu as pltpu


def _round_up(x: int, m: int) -> int:
    return ((x + m - 1) // m) * m


def _linear_kernel(x_ref, w_ref, b_ref, o_ref):
    # x_ref: [TILE_N, K], w_ref: [WAYS_P, K] (PyTorch layout, untransposed),
    # b_ref: [1, WAYS_P], o_ref: [TILE_N, WAYS_P].
    # Contract K of x against K of W -> x @ W^T on the MXU, f32 accumulation.
    acc = lax.dot_general(
        x_ref[...],
        w_ref[...],
        dimension_numbers=(((1,), (1,)), ((), ())),
        preferred_element_type=jnp.float32,
    )
    o_ref[...] = (acc + b_ref[...].astype(jnp.float32)).astype(o_ref.dtype)


@functools.partial(jax.jit, static_argnames=("tile_n",))
def mtl_base_learner_forward(input_x, fc1_w, fc1_b, *, tile_n=512):
    """Equivalent of MTLBaseLearner.forward: F.linear(input_x, fc1_w, fc1_b).

    input_x: [N, z_dim]
    fc1_w:   [ways, z_dim]   (PyTorch linear weight convention, fed untransposed)
    fc1_b:   [ways]
    returns: [N, ways]
    """
    n, z_dim = input_x.shape
    ways = fc1_w.shape[0]

    # --- Lane-dense output: pad `ways` up to a multiple of 128 (zeros). -------
    ways_p = _round_up(ways, 128)
    if ways_p != ways:
        w_p = jnp.pad(fc1_w, ((0, ways_p - ways), (0, 0)))
        b_p = jnp.pad(fc1_b, (0, ways_p - ways))
    else:
        w_p, b_p = fc1_w, fc1_b
    b2 = b_p.reshape(1, ways_p)

    # --- Tile N; pad rows to a multiple of the tile (sublane-aligned). --------
    tile_n = min(tile_n, _round_up(n, 8))
    n_p = _round_up(n, tile_n)
    x_p = jnp.pad(input_x, ((0, n_p - n), (0, 0))) if n_p != n else input_x

    grid = (n_p // tile_n,)

    itemsize = jnp.dtype(input_x.dtype).itemsize
    cost = pl.CostEstimate(
        flops=2 * n_p * z_dim * ways_p,
        transcendentals=0,
        bytes_accessed=(x_p.size + w_p.size + b2.size + n_p * ways_p) * itemsize,
    )

    out = pl.pallas_call(
        _linear_kernel,
        out_shape=jax.ShapeDtypeStruct((n_p, ways_p), input_x.dtype),
        grid=grid,
        in_specs=[
            # x streams over the N grid.
            pl.BlockSpec((tile_n, z_dim), lambda i: (i, 0),
                         memory_space=pltpu.MemorySpace.VMEM),
            # Weight and bias are resident single blocks across the whole grid.
            pl.BlockSpec((ways_p, z_dim), lambda i: (0, 0),
                         memory_space=pltpu.MemorySpace.VMEM),
            pl.BlockSpec((1, ways_p), lambda i: (0, 0),
                         memory_space=pltpu.MemorySpace.VMEM),
        ],
        out_specs=pl.BlockSpec((tile_n, ways_p), lambda i: (i, 0),
                               memory_space=pltpu.MemorySpace.VMEM),
        compiler_params=pltpu.CompilerParams(
            dimension_semantics=("parallel",),
        ),
        cost_estimate=cost,
    )(x_p, w_p, b2)

    # Strip the N and ways padding.
    return out[:n, :ways]


def kaiming_normal_init(key, ways, z_dim, dtype=jnp.float32):
    # torch.nn.init.kaiming_normal_ default: fan_in mode, leaky_relu(a=0) gain
    # => std = sqrt(2 / fan_in), fan_in = z_dim for a [ways, z_dim] weight.
    std = jnp.sqrt(2.0 / z_dim).astype(dtype)
    return jax.random.normal(key, (ways, z_dim), dtype=dtype) * std


if __name__ == "__main__":
    key = jax.random.PRNGKey(0)
    k_x, k_w, k_x2, k_w2, k_b2 = jax.random.split(key, 5)

    # --- Case 1: shapes native to the module (ways-way classifier). -----------
    ways, z_dim, batch = 4, 32, 8
    input_x = jax.random.normal(k_x, (batch, z_dim), dtype=jnp.float32)
    fc1_w = kaiming_normal_init(k_w, ways, z_dim)
    fc1_b = jnp.zeros((ways,), dtype=jnp.float32)        # matches torch.zeros(ways)

    out = mtl_base_learner_forward(input_x, fc1_w, fc1_b)
    out = jax.block_until_ready(out)
    ref = input_x @ fc1_w.T + fc1_b
    assert out.shape == (batch, ways)
    assert jnp.allclose(out, ref, atol=1e-5, rtol=1e-5)

    # --- Case 2: exercise the N grid (>1 step) and ways/N padding paths. ------
    ways2, z_dim2, batch2 = 5, 40, 520                   # -> grid of 2 tiles of 512
    x2 = jax.random.normal(k_x2, (batch2, z_dim2), dtype=jnp.float32)
    w2 = kaiming_normal_init(k_w2, ways2, z_dim2)
    b2 = jax.random.normal(k_b2, (ways2,), dtype=jnp.float32)

    out2 = mtl_base_learner_forward(x2, w2, b2)
    out2 = jax.block_until_ready(out2)
    ref2 = x2 @ w2.T + b2
    assert out2.shape == (batch2, ways2)
    assert jnp.allclose(out2, ref2, atol=1e-4, rtol=1e-4)

    print("KERNEL_OK")
</pallas_src>

<mosaic_0001>
module attributes {stable_mosaic.version = 11 : i64} {
  func.func @_linear_kernel(%arg0: i32, %arg1: memref<8x32xf32, #tpu.memory_space<vmem>>, %arg2: memref<128x32xf32, #tpu.memory_space<vmem>>, %arg3: memref<1x128xf32, #tpu.memory_space<vmem>>, %arg4: memref<8x128xf32, #tpu.memory_space<vmem>>) attributes {dimension_semantics = [#tpu.dimension_semantics<parallel>], iteration_bounds = array<i64: 1>, scalar_prefetch = 0 : i64, scratch_operands = 0 : i64, tpu.core_type = #tpu.core_type<tc>, window_params = [{transform_indices = @transform_0, window_bounds = array<i64: 8, 32>}, {pipeline_mode = #tpu.pipeline_mode<synchronous>, transform_indices = @transform_1, window_bounds = array<i64: 128, 32>}, {pipeline_mode = #tpu.pipeline_mode<synchronous>, transform_indices = @transform_2, window_bounds = array<i64: 1, 128>}, {transform_indices = @transform_3, window_bounds = array<i64: 8, 128>}]} {
    %c0 = arith.constant 0 : index
    %c0_0 = arith.constant 0 : index
    %0 = vector.load %arg1[%c0, %c0_0] : memref<8x32xf32, #tpu.memory_space<vmem>>, vector<8x32xf32>
    %c0_1 = arith.constant 0 : index
    %c0_2 = arith.constant 0 : index
    %1 = vector.load %arg2[%c0_1, %c0_2] : memref<128x32xf32, #tpu.memory_space<vmem>>, vector<128x32xf32>
    %cst = arith.constant dense<0.000000e+00> : vector<8x128xf32>
    %2 = tpu.matmul %0, %1, %cst {dimension_numbers = #tpu.dot_dimension_numbers<[1], [1], [0], [0], [0, 0, 1, 0], [], []>} : vector<8x32xf32>, vector<128x32xf32>, vector<8x128xf32> -> vector<8x128xf32>
    %c0_3 = arith.constant 0 : index
    %c0_4 = arith.constant 0 : index
    %3 = vector.load %arg3[%c0_3, %c0_4] : memref<1x128xf32, #tpu.memory_space<vmem>>, vector<1x128xf32>
    %4 = vector.broadcast %3 : vector<1x128xf32> to vector<8x128xf32>
    %5 = arith.addf %2, %4 : vector<8x128xf32>
    %c0_5 = arith.constant 0 : index
    %c0_6 = arith.constant 0 : index
    %6 = vector.load %arg4[%c0_5, %c0_6] : memref<8x128xf32, #tpu.memory_space<vmem>>, vector<8x128xf32>
    tpu.vector_store %arg4[%c0_5, %c0_6], %5 {strides = array<i32>} : memref<8x128xf32, #tpu.memory_space<vmem>>, vector<8x128xf32>,
    return
  }
  func.func @transform_0(%arg0: i32) -> (i32, i32) {
    %c0_i32 = arith.constant 0 : i32
    %c0_i32_0 = arith.constant 0 : i32
    return %arg0, %c0_i32 : i32, i32
  }
  func.func @transform_1(%arg0: i32) -> (i32, i32) {
    %c0_i32 = arith.constant 0 : i32
    %c0_i32_0 = arith.constant 0 : i32
    %c0_i32_1 = arith.constant 0 : i32
    return %c0_i32, %c0_i32_0 : i32, i32
  }
  func.func @transform_2(%arg0: i32) -> (i32, i32) {
    %c0_i32 = arith.constant 0 : i32
    %c0_i32_0 = arith.constant 0 : i32
    %c0_i32_1 = arith.constant 0 : i32
    return %c0_i32, %c0_i32_0 : i32, i32
  }
  func.func @transform_3(%arg0: i32) -> (i32, i32) {
    %c0_i32 = arith.constant 0 : i32
    %c0_i32_0 = arith.constant 0 : i32
    return %arg0, %c0_i32 : i32, i32
  }
}

</mosaic_0001>

<bundles_post_ra>
// kernel: mtl_base_learner_forward.1
= control target key start
LH: loop header
LB: loop body
LE: loop exit
PB: predicated region body
PF: predicated region fallthrough
CT: control target
= control target key end

     0   :  { %vm38_vm0 = vcmask 261120   ;;  %v270_v0 = vmov 0.0|0.0   ;;  %vm271_vm2 = vmmov 0   ;;  %v272_v4 = vmov 0.0   ;;  %s373_s1 = inlined_call_operand.vmem [shape: f32[128,32], index: 1, kind: input, shape index: {}]   ;;  %s374_s0 = inlined_call_operand.vmem [shape: f32[8,32], index: 0, kind: input, shape index: {}]   ;;  %s375_s2 = inlined_call_operand.vmem [shape: f32[1,128], index: 2, kind: input, shape index: {}]   ;;  %s376_s3 = inlined_call_operand.vmem [shape: f32[8,128], index: 3, kind: output, shape index: {}]  }
   0x1   :  { %235 = vmatprep.subr.bf16.mxu0 %v270_v0  ;;  %v15_v1 = vld [vmem:[%s373_s1] sm:$0xff]  ;;  %v16_v2 = vld [vmem:[%s373_s1 + $0x8] sm:$0xff]  ;;  %vm301_vm1 = vmpackc.low %vm38_vm0, %vm38_vm0  ;;  %232 = vmatprep.mubr.msk.f32.mxu0 %vm271_vm2, %v272_v4 }
   0x2   :  { %v236_v5 = vpack.c.bf16 %v16_v2, %v15_v1  ;;  %v17_v6 = vld [vmem:[%s373_s1 + $0x10] sm:$0xff]  ;;  %v18_v7 = vld [vmem:[%s373_s1 + $0x18] sm:$0xff]  ;;  %v19_v9 = vld [vmem:[%s373_s1 + $0x20] sm:$0xff] }
   0x3   :  { %v240_v8 = vpack.c.bf16 %v18_v7, %v17_v6  ;;  %v20_v10 = vld [vmem:[%s373_s1 + $0x28] sm:$0xff]  ;;  %v21_v12 = vld [vmem:[%s373_s1 + $0x30] sm:$0xff]  ;;  %v22_v13 = vld [vmem:[%s373_s1 + $0x38] sm:$0xff] }
   0x4   :  { %238 = vmatpush3.bf16.xpose.msk.msra.mxu0 %vm301_vm1, %v236_v5  ;;  %v244_v11 = vpack.c.bf16 %v20_v10, %v19_v9  ;;  %v248_v14 = vpack.c.bf16 %v22_v13, %v21_v12  ;;  %v23_v15 = vld [vmem:[%s373_s1 + $0x40] sm:$0xff]  ;;  %v24_v16 = vld [vmem:[%s373_s1 + $0x48] sm:$0xff]  ;;  %v25_v18 = vld [vmem:[%s373_s1 + $0x50] sm:$0xff] }
   0x5   :  { %239 = vmatprep.subr.bf16.mxu0 %v270_v0  ;;  %v252_v17 = vpack.c.bf16 %v24_v16, %v23_v15  ;;  %v26_v19 = vld [vmem:[%s373_s1 + $0x58] sm:$0xff]  ;;  %v27_v21 = vld [vmem:[%s373_s1 + $0x60] sm:$0xff]  ;;  %v28_v22 = vld [vmem:[%s373_s1 + $0x68] sm:$0xff] }
   0x6   :  { %v256_v20 = vpack.c.bf16 %v26_v19, %v25_v18  ;;  %v260_v23 = vpack.c.bf16 %v28_v22, %v27_v21  ;;  %v29_v24 = vld [vmem:[%s373_s1 + $0x70] sm:$0xff]  ;;  %v30_v25 = vld [vmem:[%s373_s1 + $0x78] sm:$0xff]  ;;  %v14_v27 = vld [vmem:[%s374_s0] sm:$0xff] }
   0x7   :  { %v264_v26 = vpack.c.bf16 %v30_v25, %v29_v24  ;;  %v165_v28 = vld [vmem:[%s375_s2] ss:$0 sm:$0xff] }
   0xc   :  { %242 = vmatpush3.bf16.xpose.msk.msra.mxu0 %vm301_vm1, %v240_v8 }
   0xd   :  { %243 = vmatprep.subr.bf16.mxu0 %v270_v0 }
  0x14   :  { %246 = vmatpush3.bf16.xpose.msk.msra.mxu0 %vm301_vm1, %v244_v11 }
  0x15   :  { %247 = vmatprep.subr.bf16.mxu0 %v270_v0 }
  0x1c   :  { %250 = vmatpush3.bf16.xpose.msk.msra.mxu0 %vm301_vm1, %v248_v14 }
  0x1d   :  { %251 = vmatprep.subr.bf16.mxu0 %v270_v0 }
  0x24   :  { %254 = vmatpush3.bf16.xpose.msk.msra.mxu0 %vm301_vm1, %v252_v17 }
  0x25   :  { %255 = vmatprep.subr.bf16.mxu0 %v270_v0 }
  0x2c   :  { %258 = vmatpush3.bf16.xpose.msk.msra.mxu0 %vm301_vm1, %v256_v20 }
  0x2d   :  { %259 = vmatprep.subr.bf16.mxu0 %v270_v0 }
  0x34   :  { %262 = vmatpush3.bf16.xpose.msk.msra.mxu0 %vm301_vm1, %v260_v23 }
  0x35   :  { %263 = vmatprep.subr.bf16.mxu0 %v270_v0 }
  0x3c   :  { %266 = vmatpush3.bf16.xpose.msk.msra.mxu0 %vm301_vm1, %v264_v26 }
  0x43   :  { %233 = vmatmul.mubr.msk.f32.vlgmr.msra.gmra.mrb[0].mxu0 %vm38_vm0, %v14_v27 }
 0x116   :  { %v156_v29 = vpop.f32.mrb[0].mxu0 }
 0x117   :  { %v157_v30 = vadd.f32 %v165_v28, %v156_v29  ;;  %v234_v31 = vpop.f32.mrb[1].mxu0 }
 0x119   :  { %160 = vst [vmem:[%s376_s3] sm:$0xff] %v157_v30 }

</bundles_post_ra>
